<compile_context>
chip_gen: v7x
topology: tpu7x:2x2x1
jax: 0.10.0
libtpu: 0.0.40
codegen_flags: <defaults>
</compile_context>

<pallas_src>
import functools

import jax
import jax.numpy as jnp
from jax.experimental import pallas as pl
from jax.experimental.pallas import tpu as pltpu

BN_EPS = 1e-5


def _round_up(x, m):
    return ((x + m - 1) // m) * m


def _pick_spatial_tile(hw, cap):
    """Spatial tile: min(cap, hw) rounded up to sublane granularity (8)."""
    return _round_up(min(cap, hw), 8)


# ----------------------------------------------------------------------------
# One-time weight preparation (hoisted out of the forward pass).
# ----------------------------------------------------------------------------
def _fold_head_params(params, n_feat, f_pad, n_out_pad=128):
    """Fold BN1/BN2 (eval) into W1/W2; scatter rows to the padded pooled layout."""
    g1, b1, m1, v1 = params["bn1"]                       # each (2F,)
    w1 = params["w1"]                                    # (2F, hidden)
    s1 = g1 * jax.lax.rsqrt(v1 + BN_EPS)
    w1s = w1 * s1[:, None]
    bias1 = (b1 - m1 * s1) @ w1                          # (hidden,)
    hidden = w1.shape[1]
    w1f = jnp.zeros((2 * f_pad, hidden), jnp.float32)
    w1f = w1f.at[:n_feat].set(w1s[:n_feat])              # max-pool rows
    w1f = w1f.at[f_pad:f_pad + n_feat].set(w1s[n_feat:])  # avg-pool rows

    g2, b2, m2, v2 = params["bn2"]                       # each (hidden,)
    w2 = params["w2"]                                    # (hidden, n_out)
    s2 = g2 * jax.lax.rsqrt(v2 + BN_EPS)
    w2s = w2 * s2[:, None]
    bias2 = (b2 - m2 * s2) @ w2                          # (n_out,)
    n_out = w2.shape[1]
    w2f = jnp.zeros((hidden, n_out_pad), jnp.float32).at[:, :n_out].set(w2s)
    b2f = jnp.zeros((1, n_out_pad), jnp.float32).at[0, :n_out].set(bias2)
    return w1f, bias1.reshape(1, hidden), w2f, b2f


def prepare_params(params):
    """Build all kernel-side constant operands once (load time, not per call)."""
    conv_w = params["conv_w"]                            # (F, C, 3, 3)
    F, C = conv_w.shape[:2]
    K = C * 9
    Kp = _round_up(K + 1, 8)                             # +1: folded-bias ones column
    Fp = _round_up(F, 128)                               # keep Fp = 128 (review: do NOT pad to 256)

    w_mat = jnp.zeros((Kp, Fp), jnp.float32)
    w_mat = w_mat.at[:K, :F].set(conv_w.reshape(F, K).T)
    w_mat = w_mat.at[K, :F].set(params["conv_b"])        # conv bias row (hits ones column)
    w_mat = w_mat.astype(jnp.bfloat16)

    w1f, b1f, w2f, b2f = _fold_head_params(params, F, Fp)
    return {"w_mat": w_mat, "w1f": w1f, "b1f": b1f, "w2f": w2f, "b2f": b2f}


# ----------------------------------------------------------------------------
# Fused kernel: conv(3x3 as matmul, bias folded) + ReLU + max/avg pooling,
# with the BN-folded head + final ReLU fused into the last-spatial-tile epilogue.
#   grid = (batch_blocks, n_spatial_tiles)   (reduction axis last)
# ----------------------------------------------------------------------------
def _stem_head_kernel(p_ref, w_ref, w1_ref, b1_ref, w2_ref, b2_ref,
                      out_ref, mx_ref, sm_ref, *, inv_hw):
    s = pl.program_id(1)

    @pl.when(s == 0)
    def _():
        # ReLU output is >= 0, so 0 is a valid identity for the running max too.
        mx_ref[...] = jnp.zeros_like(mx_ref)
        sm_ref[...] = jnp.zeros_like(sm_ref)

    bm = p_ref.shape[0]
    # bm small (<= 8): static loop of 2-D MXU dots + sublane reductions.
    for i in range(bm):
        y = jnp.dot(p_ref[i], w_ref[...], preferred_element_type=jnp.float32)
        y = jnp.maximum(y, 0.0)                              # conv + bias + ReLU
        mx_ref[pl.ds(i, 1), :] = jnp.maximum(
            mx_ref[pl.ds(i, 1), :], jnp.max(y, axis=0, keepdims=True))
        sm_ref[pl.ds(i, 1), :] = sm_ref[pl.ds(i, 1), :] + jnp.sum(
            y, axis=0, keepdims=True)

    @pl.when(s == pl.num_programs(1) - 1)
    def _():
        # AdaptiveConcatPool2d order: [max | avg]
        pooled = jnp.concatenate([mx_ref[...], sm_ref[...] * inv_hw], axis=1)
        h = jnp.dot(pooled, w1_ref[...], preferred_element_type=jnp.float32)
        h = jnp.maximum(h + b1_ref[...], 0.0)
        o = jnp.dot(h, w2_ref[...], preferred_element_type=jnp.float32)
        out_ref[...] = jnp.maximum(o + b2_ref[...], 0.0)     # final self.act ReLU


def fused_forward(patches, w_mat, w1f, b1f, w2f, b2f, *, bm, tm, hw):
    Bp, HWp, Kp = patches.shape
    Fp = w_mat.shape[1]
    NP = w2f.shape[1]
    kernel = functools.partial(_stem_head_kernel, inv_hw=1.0 / float(hw))
    return pl.pallas_call(
        kernel,
        out_shape=jax.ShapeDtypeStruct((Bp, NP), jnp.float32),
        grid_spec=pltpu.PrefetchScalarGridSpec(
            num_scalar_prefetch=0,
            grid=(Bp // bm, HWp // tm),
            in_specs=[
                pl.BlockSpec((bm, tm, Kp), lambda b, s: (b, s, 0)),   # patch tile
                pl.BlockSpec((Kp, Fp), lambda b, s: (0, 0)),          # conv W (+bias row), resident
                pl.BlockSpec(w1f.shape, lambda b, s: (0, 0)),         # head W1 (BN-folded), resident
                pl.BlockSpec(b1f.shape, lambda b, s: (0, 0)),
                pl.BlockSpec(w2f.shape, lambda b, s: (0, 0)),         # head W2 (BN-folded), resident
                pl.BlockSpec(b2f.shape, lambda b, s: (0, 0)),
            ],
            out_specs=pl.BlockSpec((bm, NP), lambda b, s: (b, 0)),    # lane-dense output block
            scratch_shapes=[pltpu.VMEM((bm, Fp), jnp.float32),        # running max
                            pltpu.VMEM((bm, Fp), jnp.float32)],       # running sum
        ),
        compiler_params=pltpu.CompilerParams(
            dimension_semantics=("parallel", "arbitrary"),
            vmem_limit_bytes=32 * 1024 * 1024,
        ),
    )(patches, w_mat, w1f, b1f, w2f, b2f)


# ----------------------------------------------------------------------------
# Full forward
# ----------------------------------------------------------------------------
def custom_model_forward(x, prep, *, spatial_tile_cap=2048, n_out=1):
    B, C, H, W = x.shape
    HW = H * W
    Kp, Fp = prep["w_mat"].shape

    # im2col glue in bf16 (tiny 3-channel input); ones column carries the conv bias.
    xb = x.astype(jnp.bfloat16)
    xp = jnp.pad(xb, ((0, 0), (0, 0), (1, 1), (1, 1)))
    patches = jnp.stack(
        [xp[:, :, i:i + H, j:j + W] for i in range(3) for j in range(3)], axis=2
    )                                                     # (B, C, 9, H, W)
    patches = patches.transpose(0, 3, 4, 1, 2).reshape(B, HW, C * 9)
    ones = jnp.ones((B, HW, 1), jnp.bfloat16)             # folded conv-bias column
    patches = jnp.concatenate([patches, ones], axis=-1)   # (B, HW, C*9+1)

    tm = _pick_spatial_tile(HW, spatial_tile_cap)
    HW_pad = _round_up(HW, tm)                            # zero rows -> 0 after ReLU -> pool-safe
    bm = min(8, B)
    B_pad = _round_up(B, bm)
    patches = jnp.pad(
        patches,
        ((0, B_pad - B), (0, HW_pad - HW), (0, Kp - (C * 9 + 1))),
    )                                                     # (B_pad, HW_pad, Kp) bf16

    out_full = fused_forward(patches, prep["w_mat"], prep["w1f"], prep["b1f"],
                             prep["w2f"], prep["b2f"], bm=bm, tm=tm, hw=HW)
    return out_full[:B, :n_out]                           # (B, n_out)


# ----------------------------------------------------------------------------
# pure-JAX f32 reference for a sanity check
# ----------------------------------------------------------------------------
def reference_forward(x, p):
    y = jax.lax.conv_general_dilated(
        x, p["conv_w"], (1, 1), "SAME",
        dimension_numbers=("NCHW", "OIHW", "NCHW"))
    y = jnp.maximum(y + p["conv_b"][None, :, None, None], 0.0)   # (B,F,H,W)
    mx = jnp.max(y, axis=(2, 3))
    avg = jnp.mean(y, axis=(2, 3))
    pooled = jnp.concatenate([mx, avg], axis=1)                  # (B, 2F)
    g1, b1, m1, v1 = p["bn1"]
    h = (pooled - m1) * jax.lax.rsqrt(v1 + BN_EPS) * g1 + b1
    h = jnp.maximum(h @ p["w1"], 0.0)
    g2, b2, m2, v2 = p["bn2"]
    h = (h - m2) * jax.lax.rsqrt(v2 + BN_EPS) * g2 + b2
    return jnp.maximum(h @ p["w2"], 0.0)


if __name__ == "__main__":
    B, CIN, H, W = 2, 3, 16, 16
    NUM_FEATURES = 32            # backbone num_features
    HIDDEN = 512                 # fastai create_head default lin_ftrs

    key = jax.random.PRNGKey(0)
    ks = jax.random.split(key, 10)

    x = jax.random.normal(ks[0], (B, CIN, H, W), jnp.float32)

    params = {
        "conv_w": 0.1 * jax.random.normal(ks[1], (NUM_FEATURES, CIN, 3, 3), jnp.float32),
        "conv_b": 0.1 * jax.random.normal(ks[2], (NUM_FEATURES,), jnp.float32),
        # BN params stacked as rows [gamma, beta, running_mean, running_var]
        "bn1": jnp.stack([
            1.0 + 0.1 * jax.random.normal(ks[3], (2 * NUM_FEATURES,), jnp.float32),
            0.05 * jax.random.normal(ks[4], (2 * NUM_FEATURES,), jnp.float32),
            0.1 * jax.random.normal(ks[5], (2 * NUM_FEATURES,), jnp.float32),
            0.5 + jnp.abs(jax.random.normal(ks[6], (2 * NUM_FEATURES,), jnp.float32)) * 0.5,
        ]),
        "w1": 0.05 * jax.random.normal(ks[7], (2 * NUM_FEATURES, HIDDEN), jnp.float32),
        "bn2": jnp.stack([
            jnp.ones((HIDDEN,), jnp.float32),
            jnp.zeros((HIDDEN,), jnp.float32),
            jnp.zeros((HIDDEN,), jnp.float32),
            jnp.ones((HIDDEN,), jnp.float32),
        ]),
        "w2": 0.05 * jax.random.normal(ks[8], (HIDDEN, 1), jnp.float32),
    }

    # one-time weight prep (BN fold, conv-weight pack, bias fold) -- hoisted out
    # of the per-call forward path.
    prep = prepare_params(params)

    ref = jax.block_until_ready(reference_forward(x, params))

    # (1) small tile cap so the toy 16x16 image exercises the multi-tile
    #     running-max/sum path AND the HW-padding path (HW=256 -> tm=96 ->
    #     3 spatial tiles with 32 zero-padded rows).
    fwd_small = jax.jit(functools.partial(custom_model_forward, spatial_tile_cap=96))
    out_small = jax.block_until_ready(fwd_small(x, prep))
    assert out_small.shape == (B, 1), out_small.shape
    assert jnp.allclose(out_small, ref, rtol=2e-2, atol=2e-2), (out_small, ref)

    # (2) default (large) tile cap: single-tile path, no spatial padding.
    fwd_big = jax.jit(custom_model_forward)
    out_big = jax.block_until_ready(fwd_big(x, prep))
    assert out_big.shape == (B, 1), out_big.shape
    assert jnp.allclose(out_big, ref, rtol=2e-2, atol=2e-2), (out_big, ref)

    print("KERNEL_OK")
</pallas_src>

<mosaic_0001>
module attributes {stable_mosaic.version = 11 : i64} {
  func.func @_stem_head_kernel(%arg0: i32, %arg1: i32, %arg2: memref<2x96x32xbf16, #tpu.memory_space<vmem>>, %arg3: memref<32x128xbf16, #tpu.memory_space<vmem>>, %arg4: memref<256x512xf32, #tpu.memory_space<vmem>>, %arg5: memref<1x512xf32, #tpu.memory_space<vmem>>, %arg6: memref<512x128xf32, #tpu.memory_space<vmem>>, %arg7: memref<1x128xf32, #tpu.memory_space<vmem>>, %arg8: memref<2x128xf32, #tpu.memory_space<vmem>>, %arg9: memref<2x128xf32, #tpu.memory_space<vmem>>, %arg10: memref<2x128xf32, #tpu.memory_space<vmem>>) attributes {dimension_semantics = [#tpu.dimension_semantics<parallel>, #tpu.dimension_semantics<arbitrary>], iteration_bounds = array<i64: 1, 3>, scalar_prefetch = 0 : i64, scratch_operands = 2 : i64, tpu.core_type = #tpu.core_type<tc>, window_params = [{transform_indices = @transform_0, window_bounds = array<i64: 2, 96, 32>}, {pipeline_mode = #tpu.pipeline_mode<synchronous>, transform_indices = @transform_1, window_bounds = array<i64: 32, 128>}, {pipeline_mode = #tpu.pipeline_mode<synchronous>, transform_indices = @transform_2, window_bounds = array<i64: 256, 512>}, {pipeline_mode = #tpu.pipeline_mode<synchronous>, transform_indices = @transform_3, window_bounds = array<i64: 1, 512>}, {pipeline_mode = #tpu.pipeline_mode<synchronous>, transform_indices = @transform_4, window_bounds = array<i64: 512, 128>}, {pipeline_mode = #tpu.pipeline_mode<synchronous>, transform_indices = @transform_5, window_bounds = array<i64: 1, 128>}, {transform_indices = @transform_6, window_bounds = array<i64: 2, 128>}]} {
    %c0_i32 = arith.constant 0 : i32
    %0 = arith.cmpi eq, %arg1, %c0_i32 : i32
    %1 = arith.extui %0 : i1 to i32
    %c0_i32_0 = arith.constant 0 : i32
    %2 = arith.cmpi ne, %1, %c0_i32_0 : i32
    scf.if %2 {
      %cst_33 = arith.constant 0.000000e+00 : f32
      %38 = vector.broadcast %cst_33 : f32 to vector<2x128xf32>
      %c0_34 = arith.constant 0 : index
      %c0_35 = arith.constant 0 : index
      %39 = vector.load %arg9[%c0_34, %c0_35] : memref<2x128xf32, #tpu.memory_space<vmem>>, vector<2x128xf32>
      tpu.vector_store %arg9[%c0_34, %c0_35], %38 {strides = array<i32>} : memref<2x128xf32, #tpu.memory_space<vmem>>, vector<2x128xf32>,
      %cst_36 = arith.constant 0.000000e+00 : f32
      %40 = vector.broadcast %cst_36 : f32 to vector<2x128xf32>
      %c0_37 = arith.constant 0 : index
      %c0_38 = arith.constant 0 : index
      %41 = vector.load %arg10[%c0_37, %c0_38] : memref<2x128xf32, #tpu.memory_space<vmem>>, vector<2x128xf32>
      tpu.vector_store %arg10[%c0_37, %c0_38], %40 {strides = array<i32>} : memref<2x128xf32, #tpu.memory_space<vmem>>, vector<2x128xf32>,
    } else {
    }
    %c0 = arith.constant 0 : index
    %c0_1 = arith.constant 0 : index
    %c0_2 = arith.constant 0 : index
    %3 = vector.load %arg2[%c0, %c0_1, %c0_2] : memref<2x96x32xbf16, #tpu.memory_space<vmem>>, vector<1x96x32xbf16>
    %4 = vector.shape_cast %3 : vector<1x96x32xbf16> to vector<96x32xbf16>
    %c0_3 = arith.constant 0 : index
    %c0_4 = arith.constant 0 : index
    %5 = vector.load %arg3[%c0_3, %c0_4] : memref<32x128xbf16, #tpu.memory_space<vmem>>, vector<32x128xbf16>
    %cst = arith.constant dense<0.000000e+00> : vector<96x128xf32>
    %6 = tpu.matmul %4, %5, %cst {dimension_numbers = #tpu.dot_dimension_numbers<[1], [0], [0], [1], [0, 0, 1, 1], [], []>} : vector<96x32xbf16>, vector<32x128xbf16>, vector<96x128xf32> -> vector<96x128xf32>
    %cst_5 = arith.constant 0.000000e+00 : f32
    %7 = vector.broadcast %cst_5 : f32 to vector<96x128xf32>
    %8 = arith.maximumf %6, %7 : vector<96x128xf32>
    %c0_6 = arith.constant 0 : index
    %c0_7 = arith.constant 0 : index
    %9 = vector.load %arg9[%c0_6, %c0_7] : memref<2x128xf32, #tpu.memory_space<vmem>>, vector<1x128xf32>
    %cst_8 = arith.constant dense<0xFF800000> : vector<128xf32>
    %10 = vector.multi_reduction <maximumf>, %8, %cst_8 [0] : vector<96x128xf32> to vector<128xf32>
    %11 = vector.shape_cast %10 : vector<128xf32> to vector<1x128xf32>
    %12 = arith.maximumf %9, %11 : vector<1x128xf32>
    %c0_9 = arith.constant 0 : index
    %c0_10 = arith.constant 0 : index
    %13 = vector.load %arg9[%c0_9, %c0_10] : memref<2x128xf32, #tpu.memory_space<vmem>>, vector<1x128xf32>
    tpu.vector_store %arg9[%c0_9, %c0_10], %12 {strides = array<i32>} : memref<2x128xf32, #tpu.memory_space<vmem>>, vector<1x128xf32>,
    %c0_11 = arith.constant 0 : index
    %c0_12 = arith.constant 0 : index
    %14 = vector.load %arg10[%c0_11, %c0_12] : memref<2x128xf32, #tpu.memory_space<vmem>>, vector<1x128xf32>
    %cst_13 = arith.constant dense<0.000000e+00> : vector<128xf32>
    %15 = vector.multi_reduction <add>, %8, %cst_13 [0] : vector<96x128xf32> to vector<128xf32>
    %16 = vector.shape_cast %15 : vector<128xf32> to vector<1x128xf32>
    %17 = arith.addf %14, %16 : vector<1x128xf32>
    %c0_14 = arith.constant 0 : index
    %c0_15 = arith.constant 0 : index
    %18 = vector.load %arg10[%c0_14, %c0_15] : memref<2x128xf32, #tpu.memory_space<vmem>>, vector<1x128xf32>
    tpu.vector_store %arg10[%c0_14, %c0_15], %17 {strides = array<i32>} : memref<2x128xf32, #tpu.memory_space<vmem>>, vector<1x128xf32>,
    %c1 = arith.constant 1 : index
    %c0_16 = arith.constant 0 : index
    %c0_17 = arith.constant 0 : index
    %19 = vector.load %arg2[%c1, %c0_16, %c0_17] : memref<2x96x32xbf16, #tpu.memory_space<vmem>>, vector<1x96x32xbf16>
    %20 = vector.shape_cast %19 : vector<1x96x32xbf16> to vector<96x32xbf16>
    %c0_18 = arith.constant 0 : index
    %c0_19 = arith.constant 0 : index
    %21 = vector.load %arg3[%c0_18, %c0_19] : memref<32x128xbf16, #tpu.memory_space<vmem>>, vector<32x128xbf16>
    %cst_20 = arith.constant dense<0.000000e+00> : vector<96x128xf32>
    %22 = tpu.matmul %20, %21, %cst_20 {dimension_numbers = #tpu.dot_dimension_numbers<[1], [0], [0], [1], [0, 0, 1, 1], [], []>} : vector<96x32xbf16>, vector<32x128xbf16>, vector<96x128xf32> -> vector<96x128xf32>
    %cst_21 = arith.constant 0.000000e+00 : f32
    %23 = vector.broadcast %cst_21 : f32 to vector<96x128xf32>
    %24 = arith.maximumf %22, %23 : vector<96x128xf32>
    %c1_22 = arith.constant 1 : index
    %c0_23 = arith.constant 0 : index
    %25 = vector.load %arg9[%c1_22, %c0_23] : memref<2x128xf32, #tpu.memory_space<vmem>>, vector<1x128xf32>
    %cst_24 = arith.constant dense<0xFF800000> : vector<128xf32>
    %26 = vector.multi_reduction <maximumf>, %24, %cst_24 [0] : vector<96x128xf32> to vector<128xf32>
    %27 = vector.shape_cast %26 : vector<128xf32> to vector<1x128xf32>
    %28 = arith.maximumf %25, %27 : vector<1x128xf32>
    %c1_25 = arith.constant 1 : index
    %c0_26 = arith.constant 0 : index
    %29 = vector.load %arg9[%c1_25, %c0_26] : memref<2x128xf32, #tpu.memory_space<vmem>>, vector<1x128xf32>
    tpu.vector_store %arg9[%c1_25, %c0_26], %28 {strides = array<i32>} : memref<2x128xf32, #tpu.memory_space<vmem>>, vector<1x128xf32>,
    %c1_27 = arith.constant 1 : index
    %c0_28 = arith.constant 0 : index
    %30 = vector.load %arg10[%c1_27, %c0_28] : memref<2x128xf32, #tpu.memory_space<vmem>>, vector<1x128xf32>
    %cst_29 = arith.constant dense<0.000000e+00> : vector<128xf32>
    %31 = vector.multi_reduction <add>, %24, %cst_29 [0] : vector<96x128xf32> to vector<128xf32>
    %32 = vector.shape_cast %31 : vector<128xf32> to vector<1x128xf32>
    %33 = arith.addf %30, %32 : vector<1x128xf32>
    %c1_30 = arith.constant 1 : index
    %c0_31 = arith.constant 0 : index
    %34 = vector.load %arg10[%c1_30, %c0_31] : memref<2x128xf32, #tpu.memory_space<vmem>>, vector<1x128xf32>
    tpu.vector_store %arg10[%c1_30, %c0_31], %33 {strides = array<i32>} : memref<2x128xf32, #tpu.memory_space<vmem>>, vector<1x128xf32>,
    %c2_i32 = arith.constant 2 : i32
    %35 = arith.cmpi eq, %arg1, %c2_i32 : i32
    %36 = arith.extui %35 : i1 to i32
    %c0_i32_32 = arith.constant 0 : i32
    %37 = arith.cmpi ne, %36, %c0_i32_32 : i32
    scf.if %37 {
      %c0_33 = arith.constant 0 : index
      %c0_34 = arith.constant 0 : index
      %38 = vector.load %arg9[%c0_33, %c0_34] : memref<2x128xf32, #tpu.memory_space<vmem>>, vector<2x128xf32>
      %c0_35 = arith.constant 0 : index
      %c0_36 = arith.constant 0 : index
      %39 = vector.load %arg10[%c0_35, %c0_36] : memref<2x128xf32, #tpu.memory_space<vmem>>, vector<2x128xf32>
      %cst_37 = arith.constant 3.906250e-03 : f32
      %40 = vector.broadcast %cst_37 : f32 to vector<2x128xf32>
      %41 = arith.mulf %39, %40 : vector<2x128xf32>
      %42 = tpu.concatenate %38, %41 in 1 : vector<2x128xf32>, vector<2x128xf32> -> vector<2x256xf32>
      %c0_38 = arith.constant 0 : index
      %c0_39 = arith.constant 0 : index
      %43 = vector.load %arg4[%c0_38, %c0_39] : memref<256x512xf32, #tpu.memory_space<vmem>>, vector<256x512xf32>
      %cst_40 = arith.constant dense<0.000000e+00> : vector<2x512xf32>
      %44 = tpu.matmul %42, %43, %cst_40 {dimension_numbers = #tpu.dot_dimension_numbers<[1], [0], [0], [1], [0, 0, 1, 1], [], []>} : vector<2x256xf32>, vector<256x512xf32>, vector<2x512xf32> -> vector<2x512xf32>
      %c0_41 = arith.constant 0 : index
      %c0_42 = arith.constant 0 : index
      %45 = vector.load %arg5[%c0_41, %c0_42] : memref<1x512xf32, #tpu.memory_space<vmem>>, vector<1x512xf32>
      %46 = vector.broadcast %45 : vector<1x512xf32> to vector<2x512xf32>
      %47 = arith.addf %44, %46 : vector<2x512xf32>
      %cst_43 = arith.constant 0.000000e+00 : f32
      %48 = vector.broadcast %cst_43 : f32 to vector<2x512xf32>
      %49 = arith.maximumf %47, %48 : vector<2x512xf32>
      %c0_44 = arith.constant 0 : index
      %c0_45 = arith.constant 0 : index
      %50 = vector.load %arg6[%c0_44, %c0_45] : memref<512x128xf32, #tpu.memory_space<vmem>>, vector<512x128xf32>
      %cst_46 = arith.constant dense<0.000000e+00> : vector<2x128xf32>
      %51 = tpu.matmul %49, %50, %cst_46 {dimension_numbers = #tpu.dot_dimension_numbers<[1], [0], [0], [1], [0, 0, 1, 1], [], []>} : vector<2x512xf32>, vector<512x128xf32>, vector<2x128xf32> -> vector<2x128xf32>
      %c0_47 = arith.constant 0 : index
      %c0_48 = arith.constant 0 : index
      %52 = vector.load %arg7[%c0_47, %c0_48] : memref<1x128xf32, #tpu.memory_space<vmem>>, vector<1x128xf32>
      %53 = vector.broadcast %52 : vector<1x128xf32> to vector<2x128xf32>
      %54 = arith.addf %51, %53 : vector<2x128xf32>
      %cst_49 = arith.constant 0.000000e+00 : f32
      %55 = vector.broadcast %cst_49 : f32 to vector<2x128xf32>
      %56 = arith.maximumf %54, %55 : vector<2x128xf32>
      %c0_50 = arith.constant 0 : index
      %c0_51 = arith.constant 0 : index
      %57 = vector.load %arg8[%c0_50, %c0_51] : memref<2x128xf32, #tpu.memory_space<vmem>>, vector<2x128xf32>
      tpu.vector_store %arg8[%c0_50, %c0_51], %56 {strides = array<i32>} : memref<2x128xf32, #tpu.memory_space<vmem>>, vector<2x128xf32>,
    } else {
    }
    return
  }
  func.func @transform_0(%arg0: i32, %arg1: i32) -> (i32, i32, i32) {
    %c0_i32 = arith.constant 0 : i32
    %c0_i32_0 = arith.constant 0 : i32
    return %arg0, %arg1, %c0_i32 : i32, i32, i32
  }
  func.func @transform_1(%arg0: i32, %arg1: i32) -> (i32, i32) {
    %c0_i32 = arith.constant 0 : i32
    %c0_i32_0 = arith.constant 0 : i32
    %c0_i32_1 = arith.constant 0 : i32
    return %c0_i32, %c0_i32_0 : i32, i32
  }
  func.func @transform_2(%arg0: i32, %arg1: i32) -> (i32, i32) {
    %c0_i32 = arith.constant 0 : i32
    %c0_i32_0 = arith.constant 0 : i32
    %c0_i32_1 = arith.constant 0 : i32
    return %c0_i32, %c0_i32_0 : i32, i32
  }
  func.func @transform_3(%arg0: i32, %arg1: i32) -> (i32, i32) {
    %c0_i32 = arith.constant 0 : i32
    %c0_i32_0 = arith.constant 0 : i32
    %c0_i32_1 = arith.constant 0 : i32
    return %c0_i32, %c0_i32_0 : i32, i32
  }
  func.func @transform_4(%arg0: i32, %arg1: i32) -> (i32, i32) {
    %c0_i32 = arith.constant 0 : i32
    %c0_i32_0 = arith.constant 0 : i32
    %c0_i32_1 = arith.constant 0 : i32
    return %c0_i32, %c0_i32_0 : i32, i32
  }
  func.func @transform_5(%arg0: i32, %arg1: i32) -> (i32, i32) {
    %c0_i32 = arith.constant 0 : i32
    %c0_i32_0 = arith.constant 0 : i32
    %c0_i32_1 = arith.constant 0 : i32
    return %c0_i32, %c0_i32_0 : i32, i32
  }
  func.func @transform_6(%arg0: i32, %arg1: i32) -> (i32, i32) {
    %c0_i32 = arith.constant 0 : i32
    %c0_i32_0 = arith.constant 0 : i32
    return %arg0, %c0_i32 : i32, i32
  }
}

</mosaic_0001>

<bundles_post_ra>
// kernel: custom_model_forward.1
= control target key start
LH: loop header
LB: loop body
LE: loop exit
PB: predicated region body
PF: predicated region fallthrough
CT: control target
= control target key end

     0   :  { %s1911_s21 = smov 0   ;;  %s1913_s22 = smov 0   ;;  %s2597_s0 = inlined_call_operand.vmem [shape: bf16[2,288,32], index: 0, kind: input, shape index: {}]   ;;  %s2598_s1 = inlined_call_operand.vmem [shape: bf16[32,128], index: 1, kind: input, shape index: {}]   ;;  %s2599_s2 = inlined_call_operand.vmem [shape: f32[256,512], index: 2, kind: input, shape index: {}]   ;;  %s2600_s3 = inlined_call_operand.vmem [shape: f32[1,512], index: 3, kind: input, shape index: {}]   ;;  %s2601_s4 = inlined_call_operand.vmem [shape: f32[512,128], index: 4, kind: input, shape index: {}]   ;;  %s2602_s5 = inlined_call_operand.vmem [shape: f32[1,128], index: 5, kind: input, shape index: {}]   ;;  %s2603_s6 = inlined_call_operand.vmem [shape: f32[2,128], index: 6, kind: output, shape index: {}]  }
   0x1   :  { %s1915_s23 = smov 0   ;;  %s1917_s24 = smov 0  }
   0x2   :  { %s1919_s25 = smov 0  }
   0x3 LB: > { %s25_s26 = sadd.s32 1, %s1869_s24  ;;  %p44_p1 = scmp.ne.s32.totalorder %s1861_s22, %s1857_s21  ;;  %s1873_s25 = sphi %s1919_s25, %s16_s25   ;;  %s1869_s24 = sphi %s1917_s24, %s2607_s24   ;;  %s1865_s23 = sphi %s1915_s23, %s2606_s23   ;;  %s1861_s22 = sphi %s1913_s22, %s2605_s22   ;;  %s1857_s21 = sphi %s1911_s21, %s2604_s21  }
   0x4   : > { %p26_p0 = scmp.ge.s32.totalorder %s25_s26, 3  ;;  %p45_p2 = scmp.eq.s32.totalorder %s1873_s25, 0 }
   0x5   : > { %s37_s28 = sadd.s32 1, %s1861_s22  ;;  %p1416_p5 = scmp.ge.s32.totalorder %s1873_s25, 3 }
   0x6   : > { %s2609_s26 = smov (%p26_p0, %s25_s26), 0  ;;  %p46_p3 = por %p45_p2, %p44_p1 }
   0x7   : > { %s33_s27 = ssub.s32 %s1869_s24, %s2609_s26  ;;  %216 = sbr.rel (%p1416_p5) target bundleno = 25 (0x19), region = 36 }
   0x8   : > { %p35_p4 = scmp.eq.s32.totalorder %s33_s27, 0 }
   0xa   : > { %s1946_s29 = scalar_select %p35_p4, %s1861_s22, %s37_s28  }
   0xe   : > { %219 = sbr.rel (!%p46_p3) target bundleno = 25 (0x19), region = 40  ;;  %s221_s30 = sand.u32 (%p46_p3), 1, %s1861_s22  }
   0xf   : > { %s1465_s7 = smul.u32 (%p46_p3), 48, %s1869_s24 }
  0x10   : > { %s1776_s8 = smul.u32 (%p46_p3), 96, %s221_s30 }
  0x11   : > { %s229_s11 = scalar_lea.vmem (%p46_p3), %s2597_s0, %s1465_s7 }
  0x12   : > { %v245_v0 = vld [vmem:[%s229_s11] sm:$0xff] (%p46_p3)   ;;  %v249_v1 = vld [vmem:[%s229_s11 + $0x8] sm:$0xff] (%p46_p3)   ;;  %v253_v2 = vld [vmem:[%s229_s11 + $0x10] sm:$0xff] (%p46_p3)   ;;  %s223_s12 = scalar_lea.vmem (%p46_p3), [#allocation4], %s1776_s8 }
  0x13   : > { %246 = vst [vmem:[%s223_s12] sm:$0xff] (%p46_p3), %v245_v0   ;;  %250 = vst [vmem:[%s223_s12 + $0x8] sm:$0xff] (%p46_p3), %v249_v1   ;;  %v257_v3 = vld [vmem:[%s229_s11 + $0x18] sm:$0xff] (%p46_p3)   ;;  %v261_v4 = vld [vmem:[%s229_s11 + $0x20] sm:$0xff] (%p46_p3)  }
  0x14   : > { %254 = vst [vmem:[%s223_s12 + $0x10] sm:$0xff] (%p46_p3), %v253_v2   ;;  %v265_v5 = vld [vmem:[%s229_s11 + $0x28] sm:$0xff] (%p46_p3)   ;;  %258 = vst [vmem:[%s223_s12 + $0x18] sm:$0xff] (%p46_p3), %v257_v3   ;;  %v269_v6 = vld [vmem:[%s229_s11 + $0x90] sm:$0xff] (%p46_p3)  }
  0x15   : > { %262 = vst [vmem:[%s223_s12 + $0x20] sm:$0xff] %v261_v4   ;;  %266 = vst [vmem:[%s223_s12 + $0x28] sm:$0xff] %v265_v5   ;;  %v273_v7 = vld [vmem:[%s229_s11 + $0x98] sm:$0xff]   ;;  %v277_v8 = vld [vmem:[%s229_s11 + $0xa0] sm:$0xff]  }
  0x16   : > { %270 = vst [vmem:[%s223_s12 + $0x30] sm:$0xff] %v269_v6   ;;  %274 = vst [vmem:[%s223_s12 + $0x38] sm:$0xff] %v273_v7   ;;  %v281_v9 = vld [vmem:[%s229_s11 + $0xa8] sm:$0xff]   ;;  %v285_v10 = vld [vmem:[%s229_s11 + $0xb0] sm:$0xff]  }
  0x17   : > { %278 = vst [vmem:[%s223_s12 + $0x40] sm:$0xff] %v277_v8   ;;  %v289_v11 = vld [vmem:[%s229_s11 + $0xb8] sm:$0xff]   ;;  %282 = vst [vmem:[%s223_s12 + $0x48] sm:$0xff] %v281_v9  }
  0x18   : > { %286 = vst [vmem:[%s223_s12 + $0x50] sm:$0xff] %v285_v10   ;;  %290 = vst [vmem:[%s223_s12 + $0x58] sm:$0xff] %v289_v11  }
  0x19 PF: > { %p1418_p6 = scmp.ge.s32.totalorder %s1873_s25, 1  ;;  %p362_p7 = scmp.lt.s32.totalorder %s1873_s25, 4 }
  0x1b   : > { %p363_p8 = pnand %p1418_p6, %p362_p7 }
  0x1c   : > { %s369_s13 = sand.u32 (!%p363_p8), 1, %s1857_s21   ;;  %p1419_p9 = scmp.ne.s32.totalorder (!%p363_p8), %s1865_s23, 0 }
  0x1d   : > { %366 = sbr.rel (%p363_p8) target bundleno = 797 (0x31d), region = 81 }
  0x1e   : > { %s1777_s14 = smul.u32 (!%p363_p8), 96, %s369_s13 }
  0x20   : > { %s1957_s15 = scalar_lea.vmem (!%p363_p8), [#allocation4], %s1777_s14 }
  0x24   : > { %407 = sbr.rel (%p1419_p9) target bundleno = 43 (0x2b), region = 89  ;;  %v1875_v12 = vmov (!%p1419_p9), 0.0  }
  0x25   : > { %408 = vst [vmem:[#allocation2] sm:$0x3] (!%p1419_p9), %v1875_v12  ;;  %409 = vst [vmem:[#allocation3] sm:$0x3] (!%p1419_p9), %v1875_v12 }
  0x2b PF: > { %v1819_v13 = vld [vmem:[%s2598_s1] sm:$0xff]   ;;  %v1821_v15 = vld [vmem:[%s2598_s1 + $0x8] sm:$0xff]   ;;  %vm468_vm0 = vcmask 261120   ;;  %v1824_v18 = vld [vmem:[%s1957_s15 + $0x30] sm:$0xff]   ;;  %p1460_p10 = scmp.ne.s32.totalorder %s1865_s23, 2 }
  0x2c   : > { %v1820_v14 = vld [vmem:[%s2598_s1] sm:$0xff]   ;;  %1552 = vmatprep.subr.bf16.mxu0 %v1819_v13  ;;  %v1822_v16 = vld [vmem:[%s2598_s1 + $0x8] sm:$0xff]   ;;  %1572 = vmatprep.mubr.msk.bf16.mxu1 %vm468_vm0, %v1824_v18  ;;  %v1827_v21 = vld [vmem:[%s1957_s15 + $0x10] sm:$0xff]  }
  0x2d   : > { %1568 = vmatprep.subr.bf16.mxu1 %v1820_v14  ;;  %1553 = vmatpush3.bf16.msra.mxu0 %v1819_v13  ;;  %v1823_v17 = vld [vmem:[%s1957_s15] sm:$0xff]   ;;  %v1825_v19 = vld [vmem:[%s1957_s15 + $0x8] sm:$0xff]   ;;  %v1826_v20 = vld [vmem:[%s1957_s15 + $0x38] sm:$0xff]  }
  0x2e   : > { %1569 = vmatpush3.bf16.msra.mxu1 %v1820_v14  ;;  %1554 = vmatprep.subr.bf16.mxu0 %v1821_v15  ;;  %v1828_v22 = vld [vmem:[%s1957_s15 + $0x40] sm:$0xff]   ;;  %v1829_v23 = vld [vmem:[%s1957_s15 + $0x18] sm:$0xff]   ;;  %v1830_v24 = vld [vmem:[%s1957_s15 + $0x48] sm:$0xff]  }
  0x2f   : > { %1570 = vmatprep.subr.bf16.mxu1 %v1822_v16  ;;  %1556 = vmatprep.mubr.msk.bf16.mxu0 %vm468_vm0, %v1823_v17  ;;  %v1831_v25 = vld [vmem:[%s1957_s15 + $0x20] sm:$0xff]   ;;  %v1832_v26 = vld [vmem:[%s1957_s15 + $0x50] sm:$0xff]   ;;  %v1833_v27 = vld [vmem:[%s1957_s15 + $0x28] sm:$0xff]  }
  0x30   : > { %v1834_v28 = vld [vmem:[%s1957_s15 + $0x58] sm:$0xff]  }
  0x31   : > { %1555 = vmatpush3.bf16.msra.mxu0 %v1821_v15 }
  0x32   : > { %1571 = vmatpush3.bf16.msra.mxu1 %v1822_v16 }
  0x34   : > { %1557 = vmatmul.mubr.msk.bf16.vlgmr.msra.gmra.mrb[0].mxu0 %vm468_vm0, %v1825_v19 }
  0x35   : > { %1573 = vmatmul.mubr.msk.bf16.vlgmr.msra.gmra.mrb[0].mxu1 %vm468_vm0, %v1826_v20  ;;  %1560 = vmatprep.mubr.msk.bf16.mxu0 %vm468_vm0, %v1827_v21 }
  0x36   : > { %1576 = vmatprep.mubr.msk.bf16.mxu1 %vm468_vm0, %v1828_v22 }
  0x3c   : > { %1561 = vmatmul.mubr.msk.bf16.gmra.mrb[4].mxu0 %vm468_vm0, %v1829_v23 }
  0x3d   : > { %1577 = vmatmul.mubr.msk.bf16.gmra.mrb[4].mxu1 %vm468_vm0, %v1830_v24  ;;  %1564 = vmatprep.mubr.msk.bf16.mxu0 %vm468_vm0, %v1831_v25 }
  0x3e   : > { %1580 = vmatprep.mubr.msk.bf16.mxu1 %vm468_vm0, %v1832_v26 }
  0x44   : > { %1565 = vmatmul.mubr.msk.bf16.gmra.mrb[8].mxu0 %vm468_vm0, %v1833_v27 }
  0x45   : > { %1581 = vmatmul.mubr.msk.bf16.gmra.mrb[8].mxu1 %vm468_vm0, %v1834_v28 }
 0x107   : > { %v1558_v29 = vpop.f32.mrb[0].mxu0 }
 0x108   : > { %v1574_v30 = vpop.f32.mrb[0].mxu1  ;;  %v521_v31 = vpop.f32.mrb[1].mxu0  ;;  %v570_v41 = vmax.f32 %v1558_v29, 0.0 }
 0x109   : > { %v731_v32 = vpop.f32.mrb[1].mxu1  ;;  %v1559_v33 = vpop.f32.mrb[2].mxu0  ;;  %v568_v36 = vmax.f32 %v521_v31, 0.0  ;;  %v780_v43 = vmax.f32 %v1574_v30, 0.0 }
 0x10a   : > { %v1575_v34 = vpop.f32.mrb[2].mxu1  ;;  %v524_v35 = vpop.f32.mrb[3].mxu0  ;;  %v778_v39 = vmax.f32 %v731_v32, 0.0  ;;  %v571_v45 = vmax.f32 %v1559_v33, 0.0 }
 0x10b   : > { %v569_v37 = vmax.f32 %v524_v35, 0.0  ;;  %v734_v38 = vpop.f32.mrb[3].mxu1  ;;  %v781_v48 = vmax.f32 %v1575_v34, 0.0 }
 0x10c   : > { %v779_v40 = vmax.f32 %v734_v38, 0.0 }
 0x10d   : > { %v601_v42 = vadd.f32 %v569_v37, %v568_v36 }
 0x10e   : > { %v811_v44 = vadd.f32 %v779_v40, %v778_v39 }
 0x10f   : > { %v602_v46 = vadd.f32 %v601_v42, %v570_v41  ;;  %v1562_v47 = vpop.f32.mrb[4].mxu0 }
 0x110   : > { %v812_v49 = vadd.f32 %v811_v44, %v780_v43  ;;  %v574_v50 = vmax.f32 %v1562_v47, 0.0  ;;  %v1578_v51 = vpop.f32.mrb[4].mxu1  ;;  %v537_v52 = vpop.f32.mrb[5].mxu0 }
 0x111   : > { %v784_v53 = vmax.f32 %v1578_v51, 0.0  ;;  %v572_v54 = vmax.f32 %v537_v52, 0.0  ;;  %v603_v55 = vadd.f32 %v602_v46, %v571_v45  ;;  %v747_v56 = vpop.f32.mrb[5].mxu1  ;;  %v1563_v57 = vpop.f32.mrb[6].mxu0 }
 0x112   : > { %v583_v58 = vmax.f32 %v570_v41, %v574_v50  ;;  %v782_v59 = vmax.f32 %v747_v56, 0.0  ;;  %v813_v60 = vadd.f32 %v812_v49, %v781_v48  ;;  %v575_v61 = vmax.f32 %v1563_v57, 0.0  ;;  %v1579_v62 = vpop.f32.mrb[6].mxu1  ;;  %v540_v63 = vpop.f32.mrb[7].mxu0 }
 0x113   : > { %v793_v0 = vmax.f32 %v780_v43, %v784_v53  ;;  %v581_v1 = vmax.f32 %v568_v36, %v572_v54  ;;  %v604_v2 = vadd.f32 %v603_v55, %v572_v54  ;;  %v785_v3 = vmax.f32 %v1579_v62, 0.0  ;;  %v750_v4 = vpop.f32.mrb[7].mxu1 }
 0x114   : > { %v791_v5 = vmax.f32 %v778_v39, %v782_v59  ;;  %v814_v6 = vadd.f32 %v813_v60, %v782_v59  ;;  %v584_v7 = vmax.f32 %v571_v45, %v575_v61  ;;  %v573_v8 = vmax.f32 %v540_v63, 0.0 }
 0x115   : > { %v794_v9 = vmax.f32 %v781_v48, %v785_v3  ;;  %v783_v10 = vmax.f32 %v750_v4, 0.0 }
 0x116   : > { %v582_v11 = vmax.f32 %v569_v37, %v573_v8  ;;  %v605_v12 = vadd.f32 %v604_v2, %v573_v8 }
 0x117   : > { %v792_v13 = vmax.f32 %v779_v40, %v783_v10  ;;  %v815_v14 = vadd.f32 %v814_v6, %v783_v10  ;;  %v1566_v15 = vpop.f32.mrb[8].mxu0 }
 0x118   : > { %v606_v16 = vadd.f32 %v605_v12, %v574_v50  ;;  %v578_v17 = vmax.f32 %v1566_v15, 0.0  ;;  %v1582_v18 = vpop.f32.mrb[8].mxu1  ;;  %v553_v19 = vpop.f32.mrb[9].mxu0  ;;  %v600_v12 = vld [vmem:[#allocation3] sm:$0x1] }
 0x119   : > { %v816_v20 = vadd.f32 %v815_v14, %v784_v53  ;;  %v788_v21 = vmax.f32 %v1582_v18, 0.0  ;;  %v576_v22 = vmax.f32 %v553_v19, 0.0  ;;  %v763_v23 = vpop.f32.mrb[9].mxu1  ;;  %v1567_v24 = vpop.f32.mrb[10].mxu0  ;;  %v810_v18 = vld [vmem:[#allocation3 + $0x1] sm:$0x1] }
 0x11a   : > { %v587_v25 = vmax.f32 %v583_v58, %v578_v17  ;;  %v607_v26 = vadd.f32 %v606_v16, %v575_v61  ;;  %v786_v27 = vmax.f32 %v763_v23, 0.0  ;;  %v579_v28 = vmax.f32 %v1567_v24, 0.0  ;;  %v1583_v29 = vpop.f32.mrb[10].mxu1  ;;  %v556_v30 = vpop.f32.mrb[11].mxu0 }
 0x11b   : > { %v797_v31 = vmax.f32 %v793_v0, %v788_v21  ;;  %v585_v32 = vmax.f32 %v581_v1, %v576_v22  ;;  %v817_v33 = vadd.f32 %v816_v20, %v785_v3  ;;  %v789_v34 = vmax.f32 %v1583_v29, 0.0  ;;  %v766_v35 = vpop.f32.mrb[11].mxu1  ;;  %v844_v29 = vld [vmem:[%s2599_s2 + $0x38] sm:$0xff] (!%p1460_p10) }
 0x11c   : > { %v608_v36 = vadd.f32 %v607_v26, %v576_v22  ;;  %v795_v37 = vmax.f32 %v791_v5, %v786_v27  ;;  %v588_v38 = vmax.f32 %v584_v7, %v579_v28  ;;  %v577_v39 = vmax.f32 %v556_v30, 0.0  ;;  %v842_v26 = vld [vmem:[%s2599_s2 + $0x28] sm:$0xff] (!%p1460_p10)  ;;  %v837_v30 = vld [vmem:[%s2599_s2] sm:$0xff] (!%p1460_p10) }
 0x11d   : > { %v818_v40 = vadd.f32 %v817_v33, %v786_v27  ;;  %v798_v41 = vmax.f32 %v794_v9, %v789_v34  ;;  %v787_v42 = vmax.f32 %v766_v35, 0.0  ;;  %v840_v27 = vld [vmem:[%s2599_s2 + $0x18] sm:$0xff] (!%p1460_p10)  ;;  %v843_v35 = vld [vmem:[%s2599_s2 + $0x30] sm:$0xff] (!%p1460_p10) }
 0x11e   : > { %v590_v43 = vmax.f32 %v587_v25, %v588_v38  ;;  %v586_v44 = vmax.f32 %v582_v11, %v577_v39  ;;  %v609_v45 = vadd.f32 %v608_v36, %v577_v39  ;;  %v580_v11 = vld [vmem:[#allocation2] sm:$0x1]  ;;  %v838_v25 = vld [vmem:[%s2599_s2 + $0x8] sm:$0xff] (!%p1460_p10)  ;;  %v848_v39 = vld [vmem:[%s2599_s2 + $0x58] sm:$0xff] (!%p1460_p10) }
 0x11f   : > { %v800_v46 = vmax.f32 %v797_v31, %v798_v41  ;;  %v796_v47 = vmax.f32 %v792_v13, %v787_v42  ;;  %v819_v48 = vadd.f32 %v818_v40, %v787_v42  ;;  %v841_v31 = vld [vmem:[%s2599_s2 + $0x20] sm:$0xff] (!%p1460_p10)  ;;  %v846_v36 = vld [vmem:[%s2599_s2 + $0x48] sm:$0xff] (!%p1460_p10)  ;;  %v852_v40 = vld [vmem:[%s2599_s2 + $0x78] sm:$0xff] (!%p1460_p10) }
 0x120   : > { %v589_v49 = vmax.f32 %v585_v32, %v586_v44  ;;  %v610_v50 = vadd.f32 %v609_v45, %v578_v17  ;;  %v790_v17 = vld [vmem:[#allocation2 + $0x1] sm:$0x1]  ;;  %v1648_v32 = vpack.c.bf16 (!%p1460_p10), %v844_v29, %v840_v27  ;;  %v1586_v33 = vpack.c.bf16 (!%p1460_p10), %v841_v31, %v837_v30  ;;  %v850_v38 = vld [vmem:[%s2599_s2 + $0x68] sm:$0xff] (!%p1460_p10)  ;;  %v847_v45 = vld [vmem:[%s2599_s2 + $0x50] sm:$0xff] (!%p1460_p10) }
 0x121   : > { %v799_v51 = vmax.f32 %v795_v37, %v796_v47  ;;  %v820_v52 = vadd.f32 %v819_v48, %v788_v21  ;;  %v1588_v41 = vpack.c.bf16 (!%p1460_p10), %v850_v38, %v846_v36  ;;  %v1652_v42 = vpack.c.bf16 (!%p1460_p10), %v852_v40, %v848_v39  ;;  %v849_v44 = vld [vmem:[%s2599_s2 + $0x60] sm:$0xff] (!%p1460_p10)  ;;  %v851_v47 = vld [vmem:[%s2599_s2 + $0x70] sm:$0xff] (!%p1460_p10)  ;;  %v854_v48 = vld [vmem:[%s2599_s2 + $0x88] sm:$0xff] (!%p1460_p10) }
 0x122   : > { %v591_v53 = vmax.f32 %v589_v49, %v590_v43  ;;  %v611_v54 = vadd.f32 %v610_v50, %v579_v28  ;;  %v1584_v28 = vpack.c.bf16 (!%p1460_p10), %v842_v26, %v838_v25  ;;  %1649 = vmatprep.subr.bf16.mxu1 (!%p1460_p10), %v1648_v32  ;;  %v845_v43 = vld [vmem:[%s2599_s2 + $0x40] sm:$0xff] (!%p1460_p10)  ;;  %v858_v49 = vld [vmem:[%s2599_s2 + $0xa8] sm:$0xff] (!%p1460_p10)  ;;  %v1654_v50 = vpack.c.bf16 (!%p1460_p10), %v851_v47, %v847_v45  ;;  %v883_v30 = vld [vmem:[%s2599_s2 + $0x170] sm:$0xff] (!%p1460_p10) }
 0x123   : > { %v801_v55 = vmax.f32 %v799_v51, %v800_v46  ;;  %v821_v56 = vadd.f32 %v820_v52, %v789_v34  ;;  %v839_v34 = vld [vmem:[%s2599_s2 + $0x10] sm:$0xff] (!%p1460_p10)  ;;  %v1590_v46 = vpack.c.bf16 (!%p1460_p10), %v849_v44, %v845_v43  ;;  %v1592_v51 = vpack.c.bf16 (!%p1460_p10), %v858_v49, %v854_v48  ;;  %v856_v52 = vld [vmem:[%s2599_s2 + $0x98] sm:$0xff] (!%p1460_p10)  ;;  %v877_v26 = vld [vmem:[%s2599_s2 + $0x140] sm:$0xff] (!%p1460_p10) }
 0x124   : > { %v592_v57 = vrot.slane %v591_v53, 4  ;;  %v612_v58 = vrot.slane %v611_v54, 4  ;;  %1585 = vmatprep.subr.bf16.mxu0 (!%p1460_p10), %v1584_v28  ;;  %v1650_v37 = vpack.c.bf16 (!%p1460_p10), %v843_v35, %v839_v34  ;;  %v881_v27 = vld [vmem:[%s2599_s2 + $0x160] sm:$0xff] (!%p1460_p10)  ;;  %v879_v28 = vld [vmem:[%s2599_s2 + $0x150] sm:$0xff] (!%p1460_p10)  ;;  %v886_v31 = vld [vmem:[%s2599_s2 + $0x188] sm:$0xff] (!%p1460_p10) }
 0x125   : > { %v802_v59 = vrot.slane %v801_v55, 4  ;;  %v822_v60 = vrot.slane %v821_v56, 4  ;;  %1587 = vmatpush1.bf16.msra.mxu0 (!%p1460_p10), %v1586_v33  ;;  %v890_v32 = vld [vmem:[%s2599_s2 + $0x1a8] sm:$0xff] (!%p1460_p10)  ;;  %v888_v33 = vld [vmem:[%s2599_s2 + $0x198] sm:$0xff] (!%p1460_p10)  ;;  %v1606_v35 = vpack.c.bf16 (!%p1460_p10), %v881_v27, %v877_v26  ;;  %v1670_v36 = vpack.c.bf16 (!%p1460_p10), %v883_v30, %v879_v28  ;;  %v885_v38 = vld [vmem:[%s2599_s2 + $0x180] sm:$0xff] (!%p1460_p10) }
 0x126   : > { %v593_v61 = vmax.f32 %v591_v53, %v592_v57  ;;  %v613_v62 = vadd.f32 %v612_v58, %v611_v54  ;;  %1651 = vmatpush1.bf16.msra.mxu1 (!%p1460_p10), %v1650_v37  ;;  %1589 = vmatprep.subr.bf16.mxu0 (!%p1460_p10), %v1588_v41  ;;  %v860_v53 = vld [vmem:[%s2599_s2 + $0xb8] sm:$0xff] (!%p1460_p10)  ;;  %v853_v54 = vld [vmem:[%s2599_s2 + $0x80] sm:$0xff] (!%p1460_p10)  ;;  %v855_v57 = vld [vmem:[%s2599_s2 + $0x90] sm:$0xff] (!%p1460_p10)  ;;  %v1608_v37 = vpack.c.bf16 (!%p1460_p10), %v890_v32, %v886_v31 }
 0x127   : > { %v803_v63 = vmax.f32 %v801_v55, %v802_v59  ;;  %v823_v0 = vadd.f32 %v822_v60, %v821_v56  ;;  %1653 = vmatprep.subr.bf16.mxu1 (!%p1460_p10), %v1652_v42  ;;  %v1656_v55 = vpack.c.bf16 (!%p1460_p10), %v860_v53, %v856_v52  ;;  %v857_v56 = vld [vmem:[%s2599_s2 + $0xa0] sm:$0xff] (!%p1460_p10)  ;;  %v859_v58 = vld [vmem:[%s2599_s2 + $0xb0] sm:$0xff] (!%p1460_p10)  ;;  %v862_v60 = vld [vmem:[%s2599_s2 + $0xc8] sm:$0xff] (!%p1460_p10) }
 0x128   : > { %v594_v1 = vrot.slane %v593_v61, 2  ;;  %v614_v2 = vrot.slane %v613_v62, 2  ;;  %v1594_v59 = vpack.c.bf16 (!%p1460_p10), %v857_v56, %v853_v54  ;;  %v892_v34 = vld [vmem:[%s2599_s2 + $0x1b8] sm:$0xff] (!%p1460_p10)  ;;  %v889_v39 = vld [vmem:[%s2599_s2 + $0x1a0] sm:$0xff] (!%p1460_p10)  ;;  %v887_v40 = vld [vmem:[%s2599_s2 + $0x190] sm:$0xff] (!%p1460_p10) }
 0x129   : > { %v804_v3 = vrot.slane %v803_v63, 2  ;;  %v824_v4 = vrot.slane %v823_v0, 2  ;;  %1591 = vmatpush1.bf16.msra.mxu0 (!%p1460_p10), %v1590_v46  ;;  %v1672_v41 = vpack.c.bf16 (!%p1460_p10), %v892_v34, %v888_v33  ;;  %v891_v42 = vld [vmem:[%s2599_s2 + $0x1b0] sm:$0xff] (!%p1460_p10)  ;;  %v894_v43 = vld [vmem:[%s2599_s2 + $0x1c8] sm:$0xff] (!%p1460_p10)  ;;  %v896_v45 = vld [vmem:[%s2599_s2 + $0x1d8] sm:$0xff] (!%p1460_p10)  ;;  %v1610_v47 = vpack.c.bf16 (!%p1460_p10), %v889_v39, %v885_v38 }
 0x12a   : > { %v595_v5 = vmax.f32 %v593_v61, %v594_v1  ;;  %v615_v6 = vadd.f32 %v614_v2, %v613_v62  ;;  %v866_v61 = vld [vmem:[%s2599_s2 + $0xe8] sm:$0xff] (!%p1460_p10)  ;;  %v864_v62 = vld [vmem:[%s2599_s2 + $0xd8] sm:$0xff] (!%p1460_p10)  ;;  %1655 = vmatpush1.bf16.msra.mxu1 (!%p1460_p10), %v1654_v50  ;;  %1593 = vmatprep.subr.bf16.mxu0 (!%p1460_p10), %v1592_v51  ;;  %v861_v2 = vld [vmem:[%s2599_s2 + $0xc0] sm:$0xff] (!%p1460_p10)  ;;  %v1674_v48 = vpack.c.bf16 (!%p1460_p10), %v891_v42, %v887_v40 }
 0x12b   : > { %v805_v7 = vmax.f32 %v803_v63, %v804_v3  ;;  %v825_v8 = vadd.f32 %v824_v4, %v823_v0  ;;  %v1658_v63 = vpack.c.bf16 (!%p1460_p10), %v859_v58, %v855_v57  ;;  %v1596_v0 = vpack.c.bf16 (!%p1460_p10), %v866_v61, %v862_v60  ;;  %v868_v1 = vld [vmem:[%s2599_s2 + $0xf8] sm:$0xff] (!%p1460_p10)  ;;  %v865_v3 = vld [vmem:[%s2599_s2 + $0xe0] sm:$0xff] (!%p1460_p10)  ;;  %1657 = vmatprep.subr.bf16.mxu1 (!%p1460_p10), %v1656_v55  ;;  %v898_v44 = vld [vmem:[%s2599_s2 + $0x1e8] sm:$0xff] (!%p1460_p10) }
 0x12c   : > { %v596_v9 = vrot.slane %v595_v5, 1  ;;  %v616_v10 = vrot.slane %v615_v6, 1  ;;  %v1660_v4 = vpack.c.bf16 (!%p1460_p10), %v868_v1, %v864_v62  ;;  %v900_v46 = vld [vmem:[%s2599_s2 + $0x1f8] sm:$0xff] (!%p1460_p10)  ;;  %v1612_v49 = vpack.c.bf16 (!%p1460_p10), %v898_v44, %v894_v43  ;;  %v893_v50 = vld [vmem:[%s2599_s2 + $0x1c0] sm:$0xff] (!%p1460_p10)  ;;  %v895_v52 = vld [vmem:[%s2599_s2 + $0x1d0] sm:$0xff] (!%p1460_p10) }
 0x12d   : > { %v806_v13 = vrot.slane %v805_v7, 1  ;;  %v826_v14 = vrot.slane %v825_v8, 1  ;;  %833 = sbr.rel (%p1460_p10) target bundleno = 797 (0x31d), region = 93  ;;  %1595 = vmatpush1.bf16.msra.mxu0 (!%p1460_p10), %v1594_v59  ;;  %v897_v51 = vld [vmem:[%s2599_s2 + $0x1e0] sm:$0xff] (!%p1460_p10)  ;;  %v1676_v53 = vpack.c.bf16 (!%p1460_p10), %v900_v46, %v896_v45  ;;  %v899_v54 = vld [vmem:[%s2599_s2 + $0x1f0] sm:$0xff] (!%p1460_p10)  ;;  %v902_v55 = vld [vmem:[%s2599_s2 + $0x208] sm:$0xff] (!%p1460_p10) }
 0x12e   : > { %v597_v15 = vmax.f32 %v595_v5, %v596_v9  ;;  %v617_v16 = vadd.f32 %v616_v10, %v615_v6  ;;  %v863_v5 = vld [vmem:[%s2599_s2 + $0xd0] sm:$0xff] (!%p1460_p10)  ;;  %v872_v9 = vld [vmem:[%s2599_s2 + $0x118] sm:$0xff] (!%p1460_p10)  ;;  %1659 = vmatpush1.bf16.msra.mxu1 (!%p1460_p10), %v1658_v63  ;;  %1597 = vmatprep.subr.bf16.mxu0 (!%p1460_p10), %v1596_v0  ;;  %v906_v56 = vld [vmem:[%s2599_s2 + $0x228] sm:$0xff] (!%p1460_p10)  ;;  %v1614_v59 = vpack.c.bf16 (!%p1460_p10), %v897_v51, %v893_v50 }
 0x12f   : > { %v807_v19 = vmax.f32 %v805_v7, %v806_v13  ;;  %v827_v20 = vadd.f32 %v826_v14, %v825_v8  ;;  %v867_v6 = vld [vmem:[%s2599_s2 + $0xf0] sm:$0xff] (!%p1460_p10)  ;;  %v870_v7 = vld [vmem:[%s2599_s2 + $0x108] sm:$0xff] (!%p1460_p10)  ;;  %v876_v10 = vld [vmem:[%s2599_s2 + $0x138] sm:$0xff] (!%p1460_p10)  ;;  %1661 = vmatprep.subr.bf16.mxu1 (!%p1460_p10), %v1660_v4  ;;  %v1678_v60 = vpack.c.bf16 (!%p1460_p10), %v899_v54, %v895_v52  ;;  %v1616_v61 = vpack.c.bf16 (!%p1460_p10), %v906_v56, %v902_v55 }
 0x130   : > { %v598_v21 = vmax.f32 %v580_v11, %v597_v15  ;;  %v618_v22 = vadd.f32 %v617_v16, %v600_v12  ;;  %v874_v8 = vld [vmem:[%s2599_s2 + $0x128] sm:$0xff] (!%p1460_p10)  ;;  %v1598_v11 = vpack.c.bf16 (!%p1460_p10), %v865_v3, %v861_v2  ;;  %v1662_v12 = vpack.c.bf16 (!%p1460_p10), %v867_v6, %v863_v5  ;;  %v869_v14 = vld [vmem:[%s2599_s2 + $0x100] sm:$0xff] (!%p1460_p10)  ;;  %v871_v16 = vld [vmem:[%s2599_s2 + $0x110] sm:$0xff] (!%p1460_p10) }
 0x131   : > { %v808_v23 = vmax.f32 %v790_v17, %v807_v19  ;;  %v828_v24 = vadd.f32 %v827_v20, %v810_v18  ;;  %v1600_v13 = vpack.c.bf16 (!%p1460_p10), %v874_v8, %v870_v7  ;;  %v873_v15 = vld [vmem:[%s2599_s2 + $0x120] sm:$0xff] (!%p1460_p10)  ;;  %v1664_v17 = vpack.c.bf16 (!%p1460_p10), %v876_v10, %v872_v9  ;;  %v875_v18 = vld [vmem:[%s2599_s2 + $0x130] sm:$0xff] (!%p1460_p10)  ;;  %v878_v19 = vld [vmem:[%s2599_s2 + $0x148] sm:$0xff] (!%p1460_p10) }
 0x132   : > { %599 = vst [vmem:[#allocation2] sm:$0x1] %v598_v21  ;;  %619 = vst [vmem:[#allocation3] sm:$0x1] %v618_v22  ;;  %v882_v20 = vld [vmem:[%s2599_s2 + $0x168] sm:$0xff] (!%p1460_p10)  ;;  %v880_v21 = vld [vmem:[%s2599_s2 + $0x158] sm:$0xff] (!%p1460_p10)  ;;  %1599 = vmatpush1.bf16.msra.mxu0 (!%p1460_p10), %v1598_v11  ;;  %1663 = vmatpush1.bf16.msra.mxu1 (!%p1460_p10), %v1662_v12 }
 0x133   : > { %809 = vst [vmem:[#allocation2 + $0x1] sm:$0x1] %v808_v23  ;;  %829 = vst [vmem:[#allocation3 + $0x1] sm:$0x1] %v828_v24  ;;  %v884_v22 = vld [vmem:[%s2599_s2 + $0x178] sm:$0xff] (!%p1460_p10)  ;;  %v1602_v23 = vpack.c.bf16 (!%p1460_p10), %v873_v15, %v869_v14  ;;  %1601 = vmatprep.subr.bf16.mxu0 (!%p1460_p10), %v1600_v13  ;;  %v1666_v24 = vpack.c.bf16 (!%p1460_p10), %v875_v18, %v871_v16  ;;  %v1604_v25 = vpack.c.bf16 (!%p1460_p10), %v882_v20, %v878_v19  ;;  %v901_v62 = vld [vmem:[%s2599_s2 + $0x200] sm:$0xff] (!%p1460_p10) }
 0x134   : > { %1665 = vmatprep.subr.bf16.mxu1 %v1664_v17  ;;  %v1668_v29 = vpack.c.bf16 %v884_v22, %v880_v21  ;;  %v904_v57 = vld [vmem:[%s2599_s2 + $0x218] sm:$0xff]  ;;  %v905_v63 = vld [vmem:[%s2599_s2 + $0x220] sm:$0xff]  ;;  %v903_v0 = vld [vmem:[%s2599_s2 + $0x210] sm:$0xff] }
 0x135   : > { %v908_v58 = vld [vmem:[%s2599_s2 + $0x238] sm:$0xff]  ;;  %v907_v2 = vld [vmem:[%s2599_s2 + $0x230] sm:$0xff]  ;;  %v910_v3 = vld [vmem:[%s2599_s2 + $0x248] sm:$0xff]  ;;  %v1618_v7 = vpack.c.bf16 %v905_v63, %v901_v62 }
 0x136   : > { %1603 = vmatpush1.bf16.msra.mxu0 %v1602_v23  ;;  %1667 = vmatpush1.bf16.msra.mxu1 %v1666_v24  ;;  %v1680_v1 = vpack.c.bf16 %v908_v58, %v904_v57  ;;  %v914_v4 = vld [vmem:[%s2599_s2 + $0x268] sm:$0xff]  ;;  %v912_v5 = vld [vmem:[%s2599_s2 + $0x258] sm:$0xff]  ;;  %v1682_v8 = vpack.c.bf16 %v907_v2, %v903_v0  ;;  %v909_v10 = vld [vmem:[%s2599_s2 + $0x240] sm:$0xff] }
 0x137   : > { %1605 = vmatprep.subr.bf16.mxu0 %v1604_v25  ;;  %1669 = vmatprep.subr.bf16.mxu1 %v1668_v29  ;;  %v916_v6 = vld [vmem:[%s2599_s2 + $0x278] sm:$0xff]  ;;  %v1620_v9 = vpack.c.bf16 %v914_v4, %v910_v3  ;;  %v913_v11 = vld [vmem:[%s2599_s2 + $0x260] sm:$0xff]  ;;  %v911_v12 = vld [vmem:[%s2599_s2 + $0x250] sm:$0xff] }
 0x138   : > { %v1684_v13 = vpack.c.bf16 %v916_v6, %v912_v5  ;;  %v915_v14 = vld [vmem:[%s2599_s2 + $0x270] sm:$0xff]  ;;  %v918_v15 = vld [vmem:[%s2599_s2 + $0x288] sm:$0xff]  ;;  %v920_v17 = vld [vmem:[%s2599_s2 + $0x298] sm:$0xff]  ;;  %v1622_v19 = vpack.c.bf16 %v913_v11, %v909_v10 }
 0x139   : > { %v922_v16 = vld [vmem:[%s2599_s2 + $0x2a8] sm:$0xff]  ;;  %v924_v18 = vld [vmem:[%s2599_s2 + $0x2b8] sm:$0xff]  ;;  %v1686_v20 = vpack.c.bf16 %v915_v14, %v911_v12  ;;  %v917_v22 = vld [vmem:[%s2599_s2 + $0x280] sm:$0xff] }
 0x13a   : > { %1607 = vmatpush1.bf16.msra.mxu0 %v1606_v35  ;;  %1671 = vmatpush1.bf16.msra.mxu1 %v1670_v36  ;;  %v1624_v21 = vpack.c.bf16 %v922_v16, %v918_v15  ;;  %v921_v23 = vld [vmem:[%s2599_s2 + $0x2a0] sm:$0xff]  ;;  %v919_v24 = vld [vmem:[%s2599_s2 + $0x290] sm:$0xff]  ;;  %v1688_v25 = vpack.c.bf16 %v924_v18, %v920_v17  ;;  %v926_v27 = vld [vmem:[%s2599_s2 + $0x2c8] sm:$0xff] }
 0x13b   : > { %1609 = vmatprep.subr.bf16.mxu0 %v1608_v37  ;;  %1673 = vmatprep.subr.bf16.mxu1 %v1672_v41  ;;  %v923_v26 = vld [vmem:[%s2599_s2 + $0x2b0] sm:$0xff]  ;;  %v930_v28 = vld [vmem:[%s2599_s2 + $0x2e8] sm:$0xff]  ;;  %v928_v29 = vld [vmem:[%s2599_s2 + $0x2d8] sm:$0xff]  ;;  %v1626_v31 = vpack.c.bf16 %v921_v23, %v917_v22 }
 0x13c   : > { %v932_v30 = vld [vmem:[%s2599_s2 + $0x2f8] sm:$0xff]  ;;  %v925_v32 = vld [vmem:[%s2599_s2 + $0x2c0] sm:$0xff]  ;;  %v1690_v33 = vpack.c.bf16 %v923_v26, %v919_v24  ;;  %v1628_v34 = vpack.c.bf16 %v930_v28, %v926_v27  ;;  %v927_v36 = vld [vmem:[%s2599_s2 + $0x2d0] sm:$0xff] }
 0x13d   : > { %v929_v35 = vld [vmem:[%s2599_s2 + $0x2e0] sm:$0xff]  ;;  %v931_v37 = vld [vmem:[%s2599_s2 + $0x2f0] sm:$0xff]  ;;  %v1692_v38 = vpack.c.bf16 %v932_v30, %v928_v29  ;;  %v934_v39 = vld [vmem:[%s2599_s2 + $0x308] sm:$0xff] }
 0x13e   : > { %1611 = vmatpush1.bf16.msra.mxu0 %v1610_v47  ;;  %1675 = vmatpush1.bf16.msra.mxu1 %v1674_v48  ;;  %v938_v40 = vld [vmem:[%s2599_s2 + $0x328] sm:$0xff]  ;;  %v835_v41 = vld [vmem:[#allocation3] sm:$0x3]  ;;  %v936_v42 = vld [vmem:[%s2599_s2 + $0x318] sm:$0xff]  ;;  %v1630_v45 = vpack.c.bf16 %v929_v35, %v925_v32  ;;  %v1694_v46 = vpack.c.bf16 %v931_v37, %v927_v36 }
 0x13f   : > { %1613 = vmatprep.subr.bf16.mxu0 %v1612_v49  ;;  %1677 = vmatprep.subr.bf16.mxu1 %v1676_v53  ;;  %v940_v43 = vld [vmem:[%s2599_s2 + $0x338] sm:$0xff]  ;;  %v836_v44 = vmul.f32 0.00390625, %v835_v41  ;;  %v1632_v47 = vpack.c.bf16 %v938_v40, %v934_v39  ;;  %v933_v48 = vld [vmem:[%s2599_s2 + $0x300] sm:$0xff]  ;;  %v935_v50 = vld [vmem:[%s2599_s2 + $0x310] sm:$0xff] }
 0x140   : > { %v937_v49 = vld [vmem:[%s2599_s2 + $0x320] sm:$0xff]  ;;  %v1696_v51 = vpack.c.bf16 %v940_v43, %v936_v42  ;;  %v939_v52 = vld [vmem:[%s2599_s2 + $0x330] sm:$0xff]  ;;  %v942_v53 = vld [vmem:[%s2599_s2 + $0x348] sm:$0xff] }
 0x141   : > { %v946_v54 = vld [vmem:[%s2599_s2 + $0x368] sm:$0xff]  ;;  %1051 = vmatprep.mubr.f32.mxu0 %v836_v44  ;;  %v944_v55 = vld [vmem:[%s2599_s2 + $0x358] sm:$0xff]  ;;  %1122 = vmatprep.mubr.f32.mxu1 %v836_v44  ;;  %v1634_v57 = vpack.c.bf16 %v937_v49, %v933_v48  ;;  %v1698_v58 = vpack.c.bf16 %v939_v52, %v935_v50  ;;  %v943_v62 = vld [vmem:[%s2599_s2 + $0x350] sm:$0xff] }
 0x142   : > { %1615 = vmatpush1.bf16.msra.mxu0 %v1614_v59  ;;  %1679 = vmatpush1.bf16.msra.mxu1 %v1678_v60  ;;  %v948_v56 = vld [vmem:[%s2599_s2 + $0x378] sm:$0xff]  ;;  %v1636_v59 = vpack.c.bf16 %v946_v54, %v942_v53  ;;  %v941_v60 = vld [vmem:[%s2599_s2 + $0x340] sm:$0xff]  ;;  %v947_v0 = vld [vmem:[%s2599_s2 + $0x370] sm:$0xff] }
 0x143   : > { %1617 = vmatprep.subr.bf16.mxu0 %v1616_v61  ;;  %1681 = vmatprep.subr.bf16.mxu1 %v1680_v1  ;;  %v945_v61 = vld [vmem:[%s2599_s2 + $0x360] sm:$0xff]  ;;  %v1700_v63 = vpack.c.bf16 %v948_v56, %v944_v55  ;;  %v950_v1 = vld [vmem:[%s2599_s2 + $0x388] sm:$0xff]  ;;  %v952_v3 = vld [vmem:[%s2599_s2 + $0x398] sm:$0xff]  ;;  %v1702_v6 = vpack.c.bf16 %v947_v0, %v943_v62 }
 0x144   : > { %v954_v2 = vld [vmem:[%s2599_s2 + $0x3a8] sm:$0xff]  ;;  %v956_v4 = vld [vmem:[%s2599_s2 + $0x3b8] sm:$0xff]  ;;  %v1638_v5 = vpack.c.bf16 %v945_v61, %v941_v60  ;;  %v951_v10 = vld [vmem:[%s2599_s2 + $0x390] sm:$0xff] }
 0x145   : > { %v1704_v11 = vpack.c.bf16 %v956_v4, %v952_v3  ;;  %v955_v12 = vld [vmem:[%s2599_s2 + $0x3b0] sm:$0xff]  ;;  %v962_v14 = vld [vmem:[%s2599_s2 + $0x3e8] sm:$0xff]  ;;  %v960_v15 = vld [vmem:[%s2599_s2 + $0x3d8] sm:$0xff] }
 0x146   : > { %1619 = vmatpush1.bf16.msra.mxu0 %v1618_v7  ;;  %1683 = vmatpush1.bf16.msra.mxu1 %v1682_v8  ;;  %v1640_v7 = vpack.c.bf16 %v954_v2, %v950_v1  ;;  %v949_v8 = vld [vmem:[%s2599_s2 + $0x380] sm:$0xff]  ;;  %v964_v16 = vld [vmem:[%s2599_s2 + $0x3f8] sm:$0xff]  ;;  %v1706_v18 = vpack.c.bf16 %v955_v12, %v951_v10  ;;  %v959_v22 = vld [vmem:[%s2599_s2 + $0x3d0] sm:$0xff] }
 0x147   : > { %1621 = vmatprep.subr.bf16.mxu0 %v1620_v9  ;;  %1685 = vmatprep.subr.bf16.mxu1 %v1684_v13  ;;  %v953_v9 = vld [vmem:[%s2599_s2 + $0x3a0] sm:$0xff]  ;;  %v958_v13 = vld [vmem:[%s2599_s2 + $0x3c8] sm:$0xff]  ;;  %v1708_v23 = vpack.c.bf16 %v964_v16, %v960_v15  ;;  %v963_v24 = vld [vmem:[%s2599_s2 + $0x3f0] sm:$0xff] }
 0x148   : > { %v1642_v17 = vpack.c.bf16 %v953_v9, %v949_v8  ;;  %v1150_v26 = vld [vmem:[%s2601_s4 + $0x88] sm:$0xff]  ;;  %v1181_v27 = vld [vmem:[%s2601_s4 + $0x180] sm:$0xff]  ;;  %v1710_v30 = vpack.c.bf16 %v963_v24, %v959_v22  ;;  %v1151_v37 = vld [vmem:[%s2601_s4 + $0x90] sm:$0xff] }
 0x149   : > { %v1182_v28 = vld [vmem:[%s2601_s4 + $0x188] sm:$0xff]  ;;  %v1133_v32 = vld [vmem:[%s2601_s4] sm:$0xff]  ;;  %v1183_v39 = vld [vmem:[%s2601_s4 + $0x190] sm:$0xff] }
 0x14a   : > { %1623 = vmatpush1.bf16.msra.mxu0 %v1622_v19  ;;  %1687 = vmatpush1.bf16.msra.mxu1 %v1686_v20  ;;  %v1644_v19 = vpack.c.bf16 %v962_v14, %v958_v13  ;;  %v957_v20 = vld [vmem:[%s2599_s2 + $0x3c0] sm:$0xff]  ;;  %v1744_v35 = vpack.c.bf16 %v1182_v28, %v1181_v27  ;;  %v1166_v36 = vld [vmem:[%s2601_s4 + $0x108] sm:$0xff]  ;;  %v1184_v40 = vld [vmem:[%s2601_s4 + $0x198] sm:$0xff] }
 0x14b   : > { %1625 = vmatprep.subr.bf16.mxu0 %v1624_v21  ;;  %1689 = vmatprep.subr.bf16.mxu1 %v1688_v25  ;;  %v961_v21 = vld [vmem:[%s2599_s2 + $0x3e0] sm:$0xff]  ;;  %v1748_v48 = vpack.c.bf16 %v1184_v40, %v1183_v39  ;;  %v1168_v49 = vld [vmem:[%s2601_s4 + $0x118] sm:$0xff]  ;;  %v1186_v53 = vld [vmem:[%s2601_s4 + $0x1a8] sm:$0xff] }
 0x14c   : > { %v1149_v25 = vld [vmem:[%s2601_s4 + $0x80] sm:$0xff]  ;;  %v1646_v29 = vpack.c.bf16 %v961_v21, %v957_v20  ;;  %v1170_v61 = vld [vmem:[%s2601_s4 + $0x128] sm:$0xff]  ;;  %v1155_v62 = vld [vmem:[%s2601_s4 + $0xb0] sm:$0xff] }
 0x14d   : > { %v834_v41 = vld [vmem:[#allocation2] sm:$0x3]  ;;  %v1187_v0 = vld [vmem:[%s2601_s4 + $0x1b0] sm:$0xff]  ;;  %v1188_v1 = vld [vmem:[%s2601_s4 + $0x1b8] sm:$0xff] }
 0x14e   : > { %1627 = vmatpush1.bf16.msra.mxu0 %v1626_v31  ;;  %1691 = vmatpush1.bf16.msra.mxu1 %v1690_v33  ;;  %v1712_v31 = vpack.c.bf16 %v1150_v26, %v1149_v25  ;;  %v1134_v33 = vld [vmem:[%s2601_s4 + $0x8] sm:$0xff]  ;;  %v1153_v50 = vld [vmem:[%s2601_s4 + $0xa0] sm:$0xff]  ;;  %v1756_v8 = vpack.c.bf16 %v1188_v1, %v1187_v0  ;;  %v1172_v9 = vld [vmem:[%s2601_s4 + $0x138] sm:$0xff] }
 0x14f   : > { %1629 = vmatprep.subr.bf16.mxu0 %v1628_v34  ;;  %1693 = vmatprep.subr.bf16.mxu1 %v1692_v38  ;;  %v1165_v34 = vld [vmem:[%s2601_s4 + $0x100] sm:$0xff]  ;;  %v1152_v38 = vld [vmem:[%s2601_s4 + $0x98] sm:$0xff]  ;;  %v1714_v42 = vpack.c.bf16 %v1134_v33, %v1133_v32  ;;  %v1190_v13 = vld [vmem:[%s2601_s4 + $0x1c8] sm:$0xff] }
 0x150   : > { %v1746_v43 = vpack.c.bf16 %v1166_v36, %v1165_v34  ;;  %v1716_v44 = vpack.c.bf16 %v1152_v38, %v1151_v37  ;;  %v1185_v52 = vld [vmem:[%s2601_s4 + $0x1a0] sm:$0xff]  ;;  %v1174_v21 = vld [vmem:[%s2601_s4 + $0x148] sm:$0xff]  ;;  %v1159_v22 = vld [vmem:[%s2601_s4 + $0xd0] sm:$0xff] }
 0x151   : > { %v1752_v60 = vpack.c.bf16 %v1186_v53, %v1185_v52  ;;  %v1157_v10 = vld [vmem:[%s2601_s4 + $0xc0] sm:$0xff]  ;;  %v1191_v24 = vld [vmem:[%s2601_s4 + $0x1d0] sm:$0xff]  ;;  %v1192_v25 = vld [vmem:[%s2601_s4 + $0x1d8] sm:$0xff] }
 0x152   : > { %1631 = vmatpush1.bf16.msra.mxu0 %v1630_v45  ;;  %1695 = vmatpush1.bf16.msra.mxu1 %v1694_v46  ;;  %v1135_v45 = vld [vmem:[%s2601_s4 + $0x10] sm:$0xff]  ;;  %v1136_v46 = vld [vmem:[%s2601_s4 + $0x18] sm:$0xff]  ;;  %v1189_v12 = vld [vmem:[%s2601_s4 + $0x1c0] sm:$0xff]  ;;  %v1764_v32 = vpack.c.bf16 %v1192_v25, %v1191_v24 }
 0x153   : > { %1633 = vmatprep.subr.bf16.mxu0 %v1632_v47  ;;  %1697 = vmatprep.subr.bf16.mxu1 %v1696_v51  ;;  %v1167_v47 = vld [vmem:[%s2601_s4 + $0x110] sm:$0xff]  ;;  %v1154_v51 = vld [vmem:[%s2601_s4 + $0xa8] sm:$0xff]  ;;  %v1718_v54 = vpack.c.bf16 %v1136_v46, %v1135_v45  ;;  %v1760_v20 = vpack.c.bf16 %v1190_v13, %v1189_v12  ;;  %v1176_v33 = vld [vmem:[%s2601_s4 + $0x158] sm:$0xff] }
 0x154   : > { %v1750_v55 = vpack.c.bf16 %v1168_v49, %v1167_v47  ;;  %v1720_v56 = vpack.c.bf16 %v1154_v51, %v1153_v50  ;;  %v1161_v34 = vld [vmem:[%s2601_s4 + $0xe0] sm:$0xff]  ;;  %v1194_v37 = vld [vmem:[%s2601_s4 + $0x1e8] sm:$0xff]  ;;  %v1164_v49 = vld [vmem:[%s2601_s4 + $0xf8] sm:$0xff] }
 0x155   : > { %v1193_v36 = vld [vmem:[%s2601_s4 + $0x1e0] sm:$0xff]  ;;  %v1178_v46 = vld [vmem:[%s2601_s4 + $0x168] sm:$0xff]  ;;  %v1195_v50 = vld [vmem:[%s2601_s4 + $0x1f0] sm:$0xff] }
 0x156   : > { %1635 = vmatpush1.bf16.msra.mxu0 %v1634_v57  ;;  %1699 = vmatpush1.bf16.msra.mxu1 %v1698_v58  ;;  %v1137_v57 = vld [vmem:[%s2601_s4 + $0x20] sm:$0xff]  ;;  %v1138_v58 = vld [vmem:[%s2601_s4 + $0x28] sm:$0xff]  ;;  %v1196_v52 = vld [vmem:[%s2601_s4 + $0x1f8] sm:$0xff] }
 0x157   : > { %1637 = vmatprep.subr.bf16.mxu0 %v1636_v59  ;;  %1701 = vmatprep.subr.bf16.mxu1 %v1700_v63  ;;  %v1169_v59 = vld [vmem:[%s2601_s4 + $0x120] sm:$0xff]  ;;  %v1156_v63 = vld [vmem:[%s2601_s4 + $0xb8] sm:$0xff]  ;;  %v1722_v2 = vpack.c.bf16 %v1138_v58, %v1137_v57  ;;  %v1147_v53 = vld [vmem:[%s2601_s4 + $0x70] sm:$0xff] }
 0x158   : > { %v1754_v3 = vpack.c.bf16 %v1170_v61, %v1169_v59  ;;  %v1724_v4 = vpack.c.bf16 %v1156_v63, %v1155_v62  ;;  %v1179_v57 = vld [vmem:[%s2601_s4 + $0x170] sm:$0xff]  ;;  %v1180_v58 = vld [vmem:[%s2601_s4 + $0x178] sm:$0xff]  ;;  %v965_v63 = vld [vmem:[%s2600_s3] sm:$0xf] }
 0x159   : > { %v1774_v59 = vpack.c.bf16 %v1180_v58, %v1179_v57 }
 0x15a   : > { %1639 = vmatpush1.bf16.msra.mxu0 %v1638_v5  ;;  %1703 = vmatpush1.bf16.msra.mxu1 %v1702_v6  ;;  %v1139_v5 = vld [vmem:[%s2601_s4 + $0x30] sm:$0xff]  ;;  %v1140_v6 = vld [vmem:[%s2601_s4 + $0x38] sm:$0xff] }
 0x15b   : > { %1641 = vmatprep.subr.bf16.mxu0 %v1640_v7  ;;  %1705 = vmatprep.subr.bf16.mxu1 %v1704_v11  ;;  %v1171_v7 = vld [vmem:[%s2601_s4 + $0x130] sm:$0xff]  ;;  %v1158_v11 = vld [vmem:[%s2601_s4 + $0xc8] sm:$0xff]  ;;  %v1726_v14 = vpack.c.bf16 %v1140_v6, %v1139_v5 }
 0x15c   : > { %v1758_v15 = vpack.c.bf16 %v1172_v9, %v1171_v7  ;;  %v1728_v16 = vpack.c.bf16 %v1158_v11, %v1157_v10 }
 0x15e   : > { %1643 = vmatpush1.bf16.msra.mxu0 %v1642_v17  ;;  %1707 = vmatpush1.bf16.msra.mxu1 %v1706_v18  ;;  %v1141_v17 = vld [vmem:[%s2601_s4 + $0x40] sm:$0xff]  ;;  %v1142_v18 = vld [vmem:[%s2601_s4 + $0x48] sm:$0xff] }
 0x15f   : > { %1645 = vmatprep.subr.bf16.mxu0 %v1644_v19  ;;  %1709 = vmatprep.subr.bf16.mxu1 %v1708_v23  ;;  %v1173_v19 = vld [vmem:[%s2601_s4 + $0x140] sm:$0xff]  ;;  %v1160_v23 = vld [vmem:[%s2601_s4 + $0xd8] sm:$0xff]  ;;  %v1730_v26 = vpack.c.bf16 %v1142_v18, %v1141_v17 }
 0x160   : > { %v1762_v27 = vpack.c.bf16 %v1174_v21, %v1173_v19  ;;  %v1732_v28 = vpack.c.bf16 %v1160_v23, %v1159_v22  ;;  %v1461_v21 = vld [vmem:[%s2602_s5] ss:$0 sm:$0xff] }
 0x162   : > { %1647 = vmatpush1.bf16.msra.mxu0 %v1646_v29  ;;  %1711 = vmatpush1.bf16.msra.mxu1 %v1710_v30  ;;  %v1143_v29 = vld [vmem:[%s2601_s4 + $0x50] sm:$0xff]  ;;  %v1144_v30 = vld [vmem:[%s2601_s4 + $0x58] sm:$0xff] }
 0x163   : > { %1713 = vmatprep.subr.bf16.mxu0 %v1712_v31  ;;  %1745 = vmatprep.subr.bf16.mxu1 %v1744_v35  ;;  %v1175_v31 = vld [vmem:[%s2601_s4 + $0x150] sm:$0xff]  ;;  %v1162_v35 = vld [vmem:[%s2601_s4 + $0xe8] sm:$0xff]  ;;  %v1734_v38 = vpack.c.bf16 %v1144_v30, %v1143_v29 }
 0x164   : > { %v1766_v39 = vpack.c.bf16 %v1176_v33, %v1175_v31  ;;  %v1736_v40 = vpack.c.bf16 %v1162_v35, %v1161_v34 }
 0x165   : > { %1052 = vmatmul.mubr.f32.vlgmr.msra.gmra.mrb[0].mxu0 %v834_v41  ;;  %1123 = vmatmul.mubr.f32.vlgmr.msra.gmra.mrb[0].mxu1 %v834_v41  ;;  %v1768_v41 = vpack.c.bf16 %v1194_v37, %v1193_v36 }
 0x166   : > { %1715 = vmatpush3.bf16.msra.mxu0 %v1714_v42  ;;  %1747 = vmatpush3.bf16.msra.mxu1 %v1746_v43  ;;  %v1145_v42 = vld [vmem:[%s2601_s4 + $0x60] sm:$0xff]  ;;  %v1146_v43 = vld [vmem:[%s2601_s4 + $0x68] sm:$0xff] }
 0x167   : > { %1717 = vmatprep.subr.bf16.mxu0 %v1716_v44  ;;  %1749 = vmatprep.subr.bf16.mxu1 %v1748_v48  ;;  %v1177_v44 = vld [vmem:[%s2601_s4 + $0x160] sm:$0xff]  ;;  %v1738_v45 = vpack.c.bf16 %v1146_v43, %v1145_v42  ;;  %v1163_v48 = vld [vmem:[%s2601_s4 + $0xf0] sm:$0xff] }
 0x168   : > { %v1770_v47 = vpack.c.bf16 %v1178_v46, %v1177_v44  ;;  %v1740_v51 = vpack.c.bf16 %v1164_v49, %v1163_v48 }
 0x16a   : > { %1719 = vmatpush3.bf16.msra.mxu0 %v1718_v54  ;;  %1751 = vmatpush3.bf16.msra.mxu1 %v1750_v55  ;;  %v1148_v54 = vld [vmem:[%s2601_s4 + $0x78] sm:$0xff]  ;;  %v1772_v55 = vpack.c.bf16 %v1196_v52, %v1195_v50 }
 0x16b   : > { %1721 = vmatprep.subr.bf16.mxu0 %v1720_v56  ;;  %1753 = vmatprep.subr.bf16.mxu1 %v1752_v60  ;;  %v1742_v56 = vpack.c.bf16 %v1148_v54, %v1147_v53  ;;  %v967_v60 = vlaneseq }
 0x16d   : > { %v968_v61 = vshrl.u32 %v967_v60, 7 }
 0x16e   : > { %1723 = vmatpush3.bf16.msra.mxu0 %v1722_v2  ;;  %1755 = vmatpush3.bf16.msra.mxu1 %v1754_v3 }
 0x16f   : > { %1725 = vmatprep.subr.bf16.mxu0 %v1724_v4  ;;  %1757 = vmatprep.subr.bf16.mxu1 %v1756_v8  ;;  %v969_v62 = vsub.s32 0, %v968_v61  ;;  %v977_v0 = vsub.s32 2, %v968_v61  ;;  %v973_v1 = vsub.s32 1, %v968_v61  ;;  %v981_v2 = vsub.s32 3, %v968_v61 }
 0x171   : > { %v970_v3 = vrot.slane %v965_v63, %v969_v62  ;;  %v978_v4 = vrot.slane %v965_v63, %v977_v0  ;;  %v974_v5 = vrot.slane %v965_v63, %v973_v1  ;;  %v982_v6 = vrot.slane %v965_v63, %v981_v2 }
 0x172   : > { %1727 = vmatpush3.bf16.msra.mxu0 %v1726_v14  ;;  %1759 = vmatpush3.bf16.msra.mxu1 %v1758_v15 }
 0x173   : > { %1729 = vmatprep.subr.bf16.mxu0 %v1728_v16  ;;  %1761 = vmatprep.subr.bf16.mxu1 %v1760_v20 }
 0x176   : > { %1731 = vmatpush3.bf16.msra.mxu0 %v1730_v26  ;;  %1763 = vmatpush3.bf16.msra.mxu1 %v1762_v27 }
 0x177   : > { %1733 = vmatprep.subr.bf16.mxu0 %v1732_v28  ;;  %1765 = vmatprep.subr.bf16.mxu1 %v1764_v32 }
 0x17a   : > { %1735 = vmatpush3.bf16.msra.mxu0 %v1734_v38  ;;  %1767 = vmatpush3.bf16.msra.mxu1 %v1766_v39 }
 0x17b   : > { %1737 = vmatprep.subr.bf16.mxu0 %v1736_v40  ;;  %1769 = vmatprep.subr.bf16.mxu1 %v1768_v41 }
 0x17e   : > { %1739 = vmatpush3.bf16.msra.mxu0 %v1738_v45  ;;  %1771 = vmatpush3.bf16.msra.mxu1 %v1770_v47 }
 0x17f   : > { %1741 = vmatprep.subr.bf16.mxu0 %v1740_v51  ;;  %1773 = vmatprep.subr.bf16.mxu1 %v1772_v55 }
 0x182   : > { %1743 = vmatpush3.bf16.msra.mxu0 %v1742_v56  ;;  %1775 = vmatpush3.bf16.msra.mxu1 %v1774_v59 }
 0x238   : > { %v1053_v7 = vpop.f32.mrb[0].mxu0  ;;  %v1124_v9 = vpop.f32.mrb[0].mxu1 }
 0x239   : > { %v1054_v8 = vadd.f32 %v1053_v7, %v970_v3  ;;  %v1055_v10 = vpop.f32.mrb[1].mxu0  ;;  %v1125_v11 = vadd.f32 %v1124_v9, %v978_v4  ;;  %v1126_v13 = vpop.f32.mrb[1].mxu1 }
 0x23a   : > { %v1056_v12 = vadd.f32 %v1055_v10, %v974_v5  ;;  %v1127_v14 = vadd.f32 %v1126_v13, %v982_v6 }
 0x23b   : > { %v1131_v15 = vmax.f32 %v1125_v11, 0.0  ;;  %v1129_v17 = vmax.f32 %v1054_v8, 0.0 }
 0x23c   : > { %v1130_v16 = vmax.f32 %v1056_v12, 0.0  ;;  %v1132_v18 = vmax.f32 %v1127_v14, 0.0 }
 0x23e   : > { %1268 = vmatprep.mubr.f32.mxu0 %v1130_v16  ;;  %1338 = vmatprep.mubr.f32.mxu1 %v1132_v18 }
 0x23f   : > { %1269 = vmatmul.mubr.f32.vlgmr.msra.gmra.mrb[2].mxu0 %v1129_v17  ;;  %1339 = vmatmul.mubr.f32.vlgmr.msra.gmra.mrb[2].mxu1 %v1131_v15 }
 0x312   : > { %v1514_v19 = vpop.f32.mrb[2].mxu0  ;;  %v1549_v20 = vpop.f32.mrb[2].mxu1 }
 0x313   : > { %v1515_v22 = vpop.f32.mrb[3].mxu0  ;;  %v1550_v24 = vpop.f32.mrb[3].mxu1 }
 0x314   : > { %v1516_v23 = vadd.f32 %v1515_v22, %v1514_v19  ;;  %v1551_v25 = vadd.f32 %v1550_v24, %v1549_v20 }
 0x316   : > { %v1271_v26 = vadd.f32 %v1516_v23, %v1461_v21 }
 0x318   : > { %v1341_v27 = vadd.f32 %v1551_v25, %v1271_v26 }
 0x31a   : > { %v1344_v28 = vmax.f32 %v1341_v27, 0.0 }
 0x31c   : > { %1345 = vst [vmem:[%s2603_s6] sm:$0x3] %v1344_v28 }
 0x31d PF: > { %s16_s25 = sadd.s32 1, %s1873_s25   ;;  %s2604_s21 = smov %s1861_s22 }
 0x31e   : > { %p13_p11 = scmp.ge.s32.totalorder %s16_s25, 5   ;;  %s2605_s22 = smov %s1946_s29 }
 0x31f   : > { %s2606_s23 = smov %s1869_s24  ;;  %s2607_s24 = smov %s2609_s26 }
 0x320   :  { %15 = sbr.rel (!%p13_p11) target bundleno = 3 (0x3), region = 129 }

</bundles_post_ra>
